<compile_context>
chip_gen: v7x
topology: tpu7x:2x2x1
jax: 0.10.0
libtpu: 0.0.40
codegen_flags: <defaults>
</compile_context>

<pallas_src>
import math
import jax
import jax.numpy as jnp
from jax.experimental import pallas as pl
from jax.experimental.pallas import tpu as pltpu

H = 10          # hidden units (layer1 out features)
LANE = 128      # lane width of the output slab
SIG_COL = H     # column of the slab that carries the sigmoid output


def _round_up(x, m):
    return ((x + m - 1) // m) * m


def _mlp_kernel(x_ref, w1_ref, p_ref, out_ref):
    # x_ref:  (TB, F)      current batch tile
    # w1_ref: (F, 128)     layer-1 weight, zero-padded past column H
    # p_ref:  (3, 128)     row0 = b1 (padded), row1 = w2 row (padded), row2[0] = b2
    # out_ref:(TB, 128)    lane-dense slab: cols [0,H) hidden, col H sigmoid
    x = x_ref[...]

    # Layer 1 on the MXU; padded columns of w1/b1 are zero so they stay 0 after ReLU.
    h = jnp.dot(x, w1_ref[...], preferred_element_type=jnp.float32)   # (TB, 128)
    h = jnp.maximum(h + p_ref[0:1, :], 0.0)

    # Layer 2 (10 -> 1): VPU multiply + XLU lane reduce (no N=1 MXU matmul).
    w2_row = p_ref[1:2, :]                                            # (1, 128)
    b2 = p_ref[2:3, 0:1]                                              # (1, 1)
    y = jnp.sum(h * w2_row, axis=-1, keepdims=True) + b2              # (TB, 1)

    # Sigmoid: EUP exp + EUP approximate reciprocal (both off the VALU slots).
    sig = pl.reciprocal(1.0 + jnp.exp(-y), approx=True)               # (TB, 1)

    # Single lane-dense store: hidden everywhere, sigmoid spliced into col SIG_COL.
    col = jax.lax.broadcasted_iota(jnp.int32, h.shape, 1)
    out_ref[...] = jnp.where(col == SIG_COL, sig, h).astype(out_ref.dtype)


def classifier_adv_forward(x, w1, b1, w2, b2, *, tb=256):
    """x: (B, F) f32; w1: (F, 10); b1: (1, 10); w2: (10, 1); b2: (1, 1).

    Returns (sigmoid_out (B,1), relu_hidden (B,10)) like Classifier_adv.forward.
    """
    B, F = x.shape
    assert w1.shape == (F, H) and w2.shape == (H, 1)

    x = x.astype(jnp.float32)

    # Pack parameters (done once in the wrapper, pure layout plumbing):
    #   w1 -> (F, 128) zero-padded; b1 / w2-row / b2 -> one (3, 128) array.
    w1p = jnp.zeros((F, LANE), jnp.float32).at[:, :H].set(w1.astype(jnp.float32))
    params = jnp.zeros((3, LANE), jnp.float32)
    params = params.at[0, :H].set(b1.reshape(-1).astype(jnp.float32))
    params = params.at[1, :H].set(w2.reshape(-1).astype(jnp.float32))
    params = params.at[2, 0].set(b2.reshape(()).astype(jnp.float32))

    # Batch tiling: TB is a multiple of 8; pad B up so every block is full.
    TB = min(tb, _round_up(B, 8))
    Bp = _round_up(B, TB)
    if Bp != B:
        x = jnp.pad(x, ((0, Bp - B), (0, 0)))
    grid = (Bp // TB,)

    slab = pl.pallas_call(
        _mlp_kernel,
        out_shape=jax.ShapeDtypeStruct((Bp, LANE), jnp.float32),
        grid=grid,
        in_specs=[
            pl.BlockSpec((TB, F), lambda i: (i, 0)),       # x streams per batch tile
            pl.BlockSpec((F, LANE), lambda i: (0, 0)),     # w1 resident across grid
            pl.BlockSpec((3, LANE), lambda i: (0, 0)),     # packed b1/w2/b2 resident
        ],
        out_specs=pl.BlockSpec((TB, LANE), lambda i: (i, 0)),
        compiler_params=pltpu.CompilerParams(
            dimension_semantics=("parallel",),             # shard batch across TCs (v7x)
        ),
        cost_estimate=pl.CostEstimate(
            flops=2 * Bp * F * LANE + 3 * Bp * LANE,
            transcendentals=2 * Bp,
            bytes_accessed=4 * (Bp * F + F * LANE + 3 * LANE + Bp * LANE),
        ),
    )(x, w1p, params)

    hidden = slab[:B, :H]                 # (B, 10)  ReLU hidden (prev_output)
    sig = slab[:B, SIG_COL:SIG_COL + 1]   # (B, 1)   sigmoid output
    return sig, hidden


def init_params(key, in_features, hidden=H, out=1):
    """kaiming_uniform_(nonlinearity='relu') for weights (as in the PyTorch module),
    PyTorch default uniform(-1/sqrt(fan_in), 1/sqrt(fan_in)) for biases."""
    k1, k2, k3, k4 = jax.random.split(key, 4)

    bound1 = math.sqrt(6.0 / in_features)
    w1 = jax.random.uniform(k1, (in_features, hidden), jnp.float32, -bound1, bound1)
    bb1 = 1.0 / math.sqrt(in_features)
    b1 = jax.random.uniform(k2, (1, hidden), jnp.float32, -bb1, bb1)

    bound2 = math.sqrt(6.0 / hidden)
    w2 = jax.random.uniform(k3, (hidden, out), jnp.float32, -bound2, bound2)
    bb2 = 1.0 / math.sqrt(hidden)
    b2 = jax.random.uniform(k4, (1, out), jnp.float32, -bb2, bb2)

    return w1, b1, w2, b2


if __name__ == "__main__":
    key = jax.random.PRNGKey(0)
    kx, kp = jax.random.split(key)

    batch, in_features = 8, 32
    x = jax.random.normal(kx, (batch, in_features), jnp.float32)
    w1, b1, w2, b2 = init_params(kp, in_features)

    sig_out, hidden = classifier_adv_forward(x, w1, b1, w2, b2)
    jax.block_until_ready((sig_out, hidden))

    # Reference check in plain JAX (same math as the PyTorch module).
    h_ref = jnp.maximum(x @ w1 + b1, 0.0)
    y_ref = jax.nn.sigmoid(h_ref @ w2 + b2)
    assert sig_out.shape == (batch, 1)
    assert hidden.shape == (batch, 10)
    assert jnp.allclose(hidden, h_ref, atol=1e-5), float(jnp.max(jnp.abs(hidden - h_ref)))
    # Sigmoid path uses the EUP approximate reciprocal -> slightly looser tolerance.
    assert jnp.allclose(sig_out, y_ref, atol=2e-3), float(jnp.max(jnp.abs(sig_out - y_ref)))

    print("KERNEL_OK")
</pallas_src>

<mosaic_0001>
module attributes {stable_mosaic.version = 11 : i64} {
  func.func @_mlp_kernel(%arg0: i32, %arg1: memref<8x32xf32, #tpu.memory_space<vmem>>, %arg2: memref<32x128xf32, #tpu.memory_space<vmem>>, %arg3: memref<3x128xf32, #tpu.memory_space<vmem>>, %arg4: memref<8x128xf32, #tpu.memory_space<vmem>>) attributes {dimension_semantics = [#tpu.dimension_semantics<parallel>], iteration_bounds = array<i64: 1>, scalar_prefetch = 0 : i64, scratch_operands = 0 : i64, tpu.core_type = #tpu.core_type<tc>, window_params = [{transform_indices = @transform_0, window_bounds = array<i64: 8, 32>}, {pipeline_mode = #tpu.pipeline_mode<synchronous>, transform_indices = @transform_1, window_bounds = array<i64: 32, 128>}, {pipeline_mode = #tpu.pipeline_mode<synchronous>, transform_indices = @transform_2, window_bounds = array<i64: 3, 128>}, {transform_indices = @transform_3, window_bounds = array<i64: 8, 128>}]} {
    %c0 = arith.constant 0 : index
    %c0_0 = arith.constant 0 : index
    %0 = vector.load %arg1[%c0, %c0_0] : memref<8x32xf32, #tpu.memory_space<vmem>>, vector<8x32xf32>
    %c0_1 = arith.constant 0 : index
    %c0_2 = arith.constant 0 : index
    %1 = vector.load %arg2[%c0_1, %c0_2] : memref<32x128xf32, #tpu.memory_space<vmem>>, vector<32x128xf32>
    %cst = arith.constant dense<0.000000e+00> : vector<8x128xf32>
    %2 = tpu.matmul %0, %1, %cst {dimension_numbers = #tpu.dot_dimension_numbers<[1], [0], [0], [1], [0, 0, 1, 1], [], []>} : vector<8x32xf32>, vector<32x128xf32>, vector<8x128xf32> -> vector<8x128xf32>
    %c0_3 = arith.constant 0 : index
    %c0_4 = arith.constant 0 : index
    %3 = vector.load %arg3[%c0_3, %c0_4] : memref<3x128xf32, #tpu.memory_space<vmem>>, vector<1x128xf32>
    %4 = vector.broadcast %3 : vector<1x128xf32> to vector<8x128xf32>
    %5 = arith.addf %2, %4 : vector<8x128xf32>
    %cst_5 = arith.constant 0.000000e+00 : f32
    %6 = vector.broadcast %cst_5 : f32 to vector<8x128xf32>
    %7 = arith.maximumf %5, %6 : vector<8x128xf32>
    %c1 = arith.constant 1 : index
    %c0_6 = arith.constant 0 : index
    %8 = vector.load %arg3[%c1, %c0_6] : memref<3x128xf32, #tpu.memory_space<vmem>>, vector<1x128xf32>
    %c2 = arith.constant 2 : index
    %c0_7 = arith.constant 0 : index
    %9 = vector.load %arg3[%c2, %c0_7] : memref<3x128xf32, #tpu.memory_space<vmem>>, vector<1x1xf32>
    %10 = vector.broadcast %8 : vector<1x128xf32> to vector<8x128xf32>
    %11 = arith.mulf %7, %10 : vector<8x128xf32>
    %cst_8 = arith.constant dense<0.000000e+00> : vector<8xf32>
    %12 = vector.multi_reduction <add>, %11, %cst_8 [1] : vector<8x128xf32> to vector<8xf32>
    %13 = vector.shape_cast %12 : vector<8xf32> to vector<8x1xf32>
    %14 = vector.broadcast %9 : vector<1x1xf32> to vector<8x1xf32>
    %15 = arith.addf %13, %14 : vector<8x1xf32>
    %cst_9 = arith.constant 0.000000e+00 : f32
    %16 = vector.broadcast %cst_9 : f32 to vector<8x1xf32>
    %17 = arith.subf %16, %15 : vector<8x1xf32>
    %18 = math.exp %17 : vector<8x1xf32>
    %cst_10 = arith.constant 1.000000e+00 : f32
    %19 = vector.broadcast %cst_10 : f32 to vector<8x1xf32>
    %20 = arith.addf %19, %18 : vector<8x1xf32>
    %21 = tpu.reciprocal %20 {approx = true} : vector<8x1xf32> -> vector<8x1xf32>
    %22 = tpu.iota {dimensions = array<i32: 1>} : vector<8x128xi32>
    %c10_i32 = arith.constant 10 : i32
    %23 = vector.broadcast %c10_i32 : i32 to vector<8x128xi32>
    %24 = arith.cmpi eq, %22, %23 : vector<8x128xi32>
    %25 = vector.shape_cast %21 : vector<8x1xf32> to vector<8x1xf32>
    %26 = vector.broadcast %25 : vector<8x1xf32> to vector<8x128xf32>
    %27 = arith.select %24, %26, %7 : vector<8x128xi1>, vector<8x128xf32>
    %c0_11 = arith.constant 0 : index
    %c0_12 = arith.constant 0 : index
    %28 = vector.load %arg4[%c0_11, %c0_12] : memref<8x128xf32, #tpu.memory_space<vmem>>, vector<8x128xf32>
    tpu.vector_store %arg4[%c0_11, %c0_12], %27 {strides = array<i32>} : memref<8x128xf32, #tpu.memory_space<vmem>>, vector<8x128xf32>,
    return
  }
  func.func @transform_0(%arg0: i32) -> (i32, i32) {
    %c0_i32 = arith.constant 0 : i32
    %c0_i32_0 = arith.constant 0 : i32
    return %arg0, %c0_i32 : i32, i32
  }
  func.func @transform_1(%arg0: i32) -> (i32, i32) {
    %c0_i32 = arith.constant 0 : i32
    %c0_i32_0 = arith.constant 0 : i32
    %c0_i32_1 = arith.constant 0 : i32
    return %c0_i32, %c0_i32_0 : i32, i32
  }
  func.func @transform_2(%arg0: i32) -> (i32, i32) {
    %c0_i32 = arith.constant 0 : i32
    %c0_i32_0 = arith.constant 0 : i32
    %c0_i32_1 = arith.constant 0 : i32
    return %c0_i32, %c0_i32_0 : i32, i32
  }
  func.func @transform_3(%arg0: i32) -> (i32, i32) {
    %c0_i32 = arith.constant 0 : i32
    %c0_i32_0 = arith.constant 0 : i32
    return %arg0, %c0_i32 : i32, i32
  }
}

</mosaic_0001>

<bundles_post_ra>
// kernel: tpu_custom_call.1
= control target key start
LH: loop header
LB: loop body
LE: loop exit
PB: predicated region body
PF: predicated region fallthrough
CT: control target
= control target key end

     0   :  { %8 = vsyncpa [#allocation3], 0  ;;  %s364_s0 = inlined_call_operand.hbm [shape: f32[8,32], index: 0, kind: input, shape index: {}]   ;;  %s365_s1 = inlined_call_operand.hbm [shape: f32[32,128], index: 1, kind: input, shape index: {}]   ;;  %s366_s2 = inlined_call_operand.vmem [shape: f32[3,128], index: 2, kind: input, shape index: {}]   ;;  %s367_s3 = inlined_call_operand.hbm [shape: f32[8,128], index: 3, kind: output, shape index: {}]  }
   0x1   :  { %9 = vsyncpa [#allocation6], 0 }
   0x2   :  { %10 = vsyncpa [#allocation4], 0  ;;  %s283_s12 = smov [#allocation2]   ;;  %s284_s14 = smov [#allocation5]  }
   0x3   :  { %s17_s13 = sshll.u32 %s283_s12, 4  ;;  %s26_s15 = sshll.u32 %s284_s14, 4  ;;  %s18_s13 = int_to_ptr.vmem [resolvable:$true] %s17_s13  ;;  %s312_s15 = int_to_ptr.vmem [resolvable:$true] %s26_s15 }
   0x4   :  { %s211_s18 = scalar_lea.hbm %s364_s0, 128 }
   0x5   :  { %p212_p0 = scmp.ne.s32.totalorder %s364_s0, %s211_s18  ;;  %p215_p1 = scmp.lt.u32.totalorder %s211_s18, %s364_s0 }
   0x7   :  { %p217_p2 = pnand %p215_p1, %p212_p0 }
   0x9   :  { %220 = shalt.err (!%p217_p2)
}
   0xa   :  { %s221_s23 = scalar_lea.vmem %s18_s13, 128  ;;  %p226_p4 = scmp.lt.s32.totalorder %s18_s13, %s18_s13 }
   0xb   :  { %p222_p3 = scmp.ne.s32.totalorder %s18_s13, %s221_s23  ;;  %p227_p5 = scmp.lt.s32.totalorder %s221_s23, %s221_s23 }
   0xd   :  { %p228_p6 = por %p227_p5, %p226_p4 }
   0xf   :  { %p229_p7 = pnand %p228_p6, %p222_p3 }
  0x11   :  { %232 = shalt.err (!%p229_p7)
}
  0x12   :  { %20 = dma.hbm_to_vmem [thread:$0]  %s364_s0, 128, %s18_s13, [#allocation3]  }
  0x13   :  { %s233_s28 = scalar_lea.hbm %s365_s1, 512 }
  0x14   :  { %p234_p8 = scmp.ne.s32.totalorder %s365_s1, %s233_s28  ;;  %p237_p9 = scmp.lt.u32.totalorder %s233_s28, %s365_s1 }
  0x16   :  { %p239_p10 = pnand %p237_p9, %p234_p8 }
  0x18   :  { %242 = shalt.err (!%p239_p10)
}
  0x19   :  { %s243_s6 = scalar_lea.vmem %s312_s15, 512  ;;  %p248_p12 = scmp.lt.s32.totalorder %s312_s15, %s312_s15 }
  0x1a   :  { %p244_p11 = scmp.ne.s32.totalorder %s312_s15, %s243_s6  ;;  %p249_p13 = scmp.lt.s32.totalorder %s243_s6, %s243_s6 }
  0x1c   :  { %p250_p0 = por %p249_p13, %p248_p12 }
  0x1e   :  { %p251_p1 = pnand %p250_p0, %p244_p11 }
  0x20   :  { %254 = shalt.err (!%p251_p1)
}
  0x21   :  { %s285_s0 = smov 128   ;;  %s286_s7 = smov 8  }
  0x22   :  { %32 = dma.hbm_to_vmem [thread:$0]  %s365_s1, 512, %s312_s15, [#allocation6], %s285_s0, %s285_s0, %s286_s7  }
  0x23   :  { %277 = dma.done.wait [#allocation3], 128  }
  0x24   :  { %278 = vsyncadd [#allocation3], 4294967168 }
  0x25   :  { %279 = dma.done.wait [#allocation6], 512  }
  0x26   :  { %280 = vsyncadd [#allocation6], 4294966784  ;;  %v287_v0 = vmov 0.0|0.0   ;;  %vm288_vm0 = vmmov 0   ;;  %v289_v1 = vmov 0.0   ;;  %v42_v2 = vld [vmem:[#allocation5] sm:$0xff]  ;;  %v145_v25 = vlaneseq }
  0x27   :  { %191 = vmatprep.subr.bf16.mxu0 %v287_v0  ;;  %188 = vmatprep.mubr.msk.f32.mxu0 %vm288_vm0, %v289_v1  ;;  %v43_v3 = vld [vmem:[#allocation5 + $0x8] sm:$0xff]  ;;  %v44_v4 = vld [vmem:[#allocation5 + $0x10] sm:$0xff]  ;;  %v45_v6 = vld [vmem:[#allocation5 + $0x18] sm:$0xff]  ;;  %vm51_vm1 = vcmask 261120   ;;  %v290_v16 = vmov 0   ;;  %s291_s15 = smov [#allocation7]  }
  0x28   :  { %v192_v5 = vpack.c.bf16 %v43_v3, %v42_v2  ;;  %v195_v7 = vpack.c.bf16 %v45_v6, %v44_v4  ;;  %v41_v8 = vld [vmem:[#allocation2] sm:$0xff]  ;;  %206 = vset.pattern.permute.xlu0 %v290_v16  ;;  %v146_v26 = vand.u32 127, %v145_v25  ;;  %s161_s16 = sshll.u32 %s291_s15, 4  ;;  %s162_s16 = int_to_ptr.vmem [resolvable:$true] %s161_s16 }
  0x29   :  { %v171_v9 = vld [vmem:[%s366_s2] ss:$0 sm:$0xff]  ;;  %v173_v13 = vld [vmem:[%s366_s2 + $0x1] ss:$0 sm:$0xff]  ;;  %v174_v17 = vld [vmem:[%s366_s2 + $0x2] ss:$0 sm:$0xff]  ;;  %p260_p3 = scmp.lt.s32.totalorder %s162_s16, %s162_s16 }
  0x2a   :  { %193 = vmatpush3.bf16.msra.mxu0 %v192_v5  ;;  %vm147_vm2 = vcmp.eq.s32.totalorder %v146_v26, 10  ;;  %s255_s2 = scalar_lea.vmem %s162_s16, 128 }
  0x2b   :  { %194 = vmatprep.subr.bf16.mxu0 %v287_v0  ;;  %p256_p2 = scmp.ne.s32.totalorder %s162_s16, %s255_s2  ;;  %p261_p4 = scmp.lt.s32.totalorder %s255_s2, %s255_s2 }
  0x2d   :  { %p262_p5 = por %p261_p4, %p260_p3 }
  0x2e   :  { %196 = vmatpush3.bf16.msra.mxu0 %v195_v7 }
  0x2f   :  { %p263_p6 = pnand %p262_p5, %p256_p2 }
  0x31   :  { %189 = vmatmul.mubr.msk.f32.vlgmr.msra.gmra.mrb[0].mxu0 %vm51_vm1, %v41_v8 }
 0x104   :  { %v121_v10 = vpop.f32.mrb[0].mxu0 }
 0x105   :  { %v122_v11 = vadd.f32 %v171_v9, %v121_v10  ;;  %v190_v12 = vpop.f32.mrb[1].mxu0 }
 0x107   :  { %v125_v14 = vmax.f32 %v122_v11, 0.0 }
 0x109   :  { %v132_v15 = vmul.f32 %v173_v13, %v125_v14 }
 0x10b   :  { %133 = vadd.xlane.f32.xlu0 %v132_v15 }
 0x198   :  { %v134_v18 = vpop.xlane.xlu0 %133 }
 0x199   :  { %v139_v19 = vadd.f32 %v174_v17, %v134_v18 }
 0x19b   :  { %v140_v20 = vsub.f32 0.0, %v139_v19 }
 0x19d   :  { %v141_v21 = vmul.f32 1.442695, %v140_v20 }
 0x19f   :  { %207 = vpow2.f32 %v141_v21 }
 0x1a9   :  { %v208_v22 = vpop.eup %207 }
 0x1aa   :  { %v143_v23 = vadd.f32 1.0, %v208_v22 }
 0x1ac   :  { %209 = vrcp.f32 %v143_v23 }
 0x1b6   :  { %v210_v24 = vpop.eup %209 }
 0x1b7   :  { %150 = vperm.xlu0 %206, %v210_v24  }
 0x236   :  { %v151_v27 = vpop.permute.xlu0 %150 }
 0x237   :  { %v153_v28 = vsel %vm147_vm2, %v151_v27, %v125_v14 }
 0x238   :  { %154 = vst [vmem:[#allocation7] sm:$0xff] %v153_v28 }
 0x239   :  { %266 = shalt.err (!%p263_p6)
}
 0x23a   :  { %s267_s19 = scalar_lea.hbm %s367_s3, 128 }
 0x23b   :  { %p268_p7 = scmp.ne.s32.totalorder %s367_s3, %s267_s19  ;;  %p271_p8 = scmp.lt.u32.totalorder %s267_s19, %s367_s3 }
 0x23d   :  { %p273_p9 = pnand %p271_p8, %p268_p7 }
 0x23f   :  { %276 = shalt.err (!%p273_p9)
}
 0x240   :  { %164 = dma.vmem_to_hbm [thread:$0]  %s162_s16, 128, %s367_s3, [#allocation4]  }
 0x241   :  { %281 = dma.done.wait [#allocation4], 128  }
 0x242   :  { %282 = vsyncadd [#allocation4], 4294967168 }
 0x243   :  { %168 = vsyncpa [#allocation3], 1 }
 0x244   :  { %169 = vsyncpa [#allocation6], 1 }
 0x245   :  { %170 = vsyncpa [#allocation4], 1 }

</bundles_post_ra>
